<compile_context>
chip_gen: v7x
topology: tpu7x:2x2x1
jax: 0.10.0
libtpu: 0.0.40
codegen_flags: <defaults>
</compile_context>

<pallas_src>
import jax
import jax.numpy as jnp
from jax.experimental import pallas as pl
from jax.experimental.pallas import tpu as pltpu


def _round_up(x, m):
    return ((x + m - 1) // m) * m


def _make_agg_kernel(d_out):
    """Builds the (dst-tile, src-tile) kernel: out = (adj / deg) @ Z_padded."""

    def kernel(adj_ref, z_ref, out_ref, acc_ref):
        k = pl.program_id(1)

        @pl.when(k == 0)
        def _init():
            acc_ref[...] = jnp.zeros_like(acc_ref)

        # adj streamed as int8 (0/1 exact); upcast to bf16 only here, feed the
        # MXU bf16 x bf16 -> f32 accumulation (no f32 tile materialization).
        adj = adj_ref[...].astype(jnp.bfloat16)                      # [tm, tk]
        acc_ref[...] += jnp.dot(adj, z_ref[...],
                                preferred_element_type=jnp.float32)  # [tm, Dp]

        @pl.when(k == pl.num_programs(1) - 1)
        def _finalize():
            acc = acc_ref[...]
            # Ones-column of Z puts the in-degree at column d_out for free.
            deg = acc[:, d_out:d_out + 1]
            # zero in-degree rows -> 0 output (matches DGL zero-message /
            # entmax `s > 0` guard semantics of the original).
            inv_deg = jnp.where(deg > 0.0, pl.reciprocal(deg), 0.0)
            out_ref[...] = (acc * inv_deg).astype(out_ref.dtype)

    return kernel


def multi_head_gat_forward(h, u, adj, wf_t, w2_src, w2_dst, head_weights,
                           *, tile_m=512, tile_k=1024):
    """Forward pass of MultiHeadGATLayer on a dense adjacency.

    h: [N, in_dim], u: [N, C], adj: [N, N] with adj[dst, src] = 1 iff edge,
    wf_t: [H, in_dim, out_dim] (fc weights, transposed), w2_*: [H, C],
    head_weights: [H].
    """
    N, F = h.shape
    H, _, D = wf_t.shape
    # u / attn_fc2 feed an alpha-entmax over a size-1 dim, which is identically
    # 1.0 -> they cannot affect the output and are unused (dead math).
    del u, w2_src, w2_dst

    # Fold the softmax head weighting into a single effective fc weight
    # (exact identity since every head applies the same (adj/deg) aggregation).
    wsm = jax.nn.softmax(head_weights.astype(jnp.float32))
    w_eff = jnp.einsum('h,hfd->fd', wsm, wf_t.astype(jnp.float32))    # [F, D]

    # Lane-padded Z width: room for the degree ones-column at index D.
    Dp = _round_up(D + 1, 128)

    # Tile / padding selection.  No whole-array fallback: non-divisible N is
    # padded with zero rows/cols (zero adj => zero degree => zero output rows,
    # sliced away below).  tm is a multiple of 32 so int8 adj tiles respect the
    # packed sublane tiling; tk is a multiple of 128 (lane dim).
    tm = min(tile_m, _round_up(N, 32))
    tk = min(tile_k, _round_up(N, 128))
    n_dst = _round_up(N, tm)          # padded dst (rows of adj / out)
    n_src = _round_up(N, tk)          # padded src (cols of adj / rows of Z)

    # Precompute Z = h @ W_eff once (hoisted out of the aggregation grid) and
    # store it bf16; append the ones-column used to recover the in-degree.
    z = jnp.dot(h.astype(jnp.float32), w_eff)                         # [N, D]
    z_pad = jnp.zeros((n_src, Dp), jnp.float32)
    z_pad = z_pad.at[:N, :D].set(z)
    z_pad = z_pad.at[:N, D].set(1.0)                                  # deg col
    z_bf16 = z_pad.astype(jnp.bfloat16)

    # adj streamed as int8 (0/1 mask is exact); padded region is all zeros.
    adj_pad = jnp.zeros((n_dst, n_src), jnp.int8)
    adj_pad = adj_pad.at[:N, :N].set(adj.astype(jnp.int8))

    grid = (n_dst // tm, n_src // tk)

    out_pad = pl.pallas_call(
        _make_agg_kernel(D),
        out_shape=jax.ShapeDtypeStruct((n_dst, Dp), jnp.float32),
        grid_spec=pltpu.PrefetchScalarGridSpec(
            num_scalar_prefetch=0,
            grid=grid,
            in_specs=[
                pl.BlockSpec((tm, tk), lambda i, k: (i, k)),    # adj tile, int8
                pl.BlockSpec((tk, Dp), lambda i, k: (k, 0)),    # Z src tile, bf16
            ],
            out_specs=pl.BlockSpec((tm, Dp), lambda i, k: (i, 0)),
            scratch_shapes=[
                pltpu.VMEM((tm, Dp), jnp.float32),              # f32 accumulator
            ],
        ),
        compiler_params=pltpu.CompilerParams(
            dimension_semantics=("parallel", "arbitrary"),
            vmem_limit_bytes=32 * 1024 * 1024),
    )(adj_pad, z_bf16)

    # Slice off lane padding / padded dst rows (lane-dense store in-kernel).
    return out_pad[:N, :D]


if __name__ == "__main__":
    key = jax.random.PRNGKey(0)
    N, F, D, H, C = 64, 32, 32, 4, 8    # nodes, in_dim, out_dim, heads, communities
    k = jax.random.split(key, 5)

    h = jax.random.normal(k[0], (N, F), jnp.float32)
    u = jax.random.normal(k[1], (N, C), jnp.float32)
    # synthetic deterministic graph (dense adjacency, self-loops so every node
    # has at least one incoming edge, like DGL graphs with added self-loops)
    adj = jax.random.bernoulli(k[2], 0.3, (N, N)).astype(jnp.float32)
    adj = jnp.maximum(adj, jnp.eye(N, dtype=jnp.float32))

    # deterministic parameter init (shapes from the module __init__)
    wf_t = jax.random.normal(k[3], (H, F, D), jnp.float32) / jnp.sqrt(float(F))
    w2 = jax.random.normal(k[4], (H, 2 * C), jnp.float32) / jnp.sqrt(2.0 * C)
    w2_src, w2_dst = w2[:, :C], w2[:, C:]
    head_weights = jnp.ones((H,), jnp.float32)   # nn.Parameter(torch.ones(num_heads))

    out = jax.block_until_ready(
        multi_head_gat_forward(h, u, adj, wf_t, w2_src, w2_dst, head_weights))

    # dense f32 reference: e == 1 on edges and alpha-entmax over equal values is
    # uniform over the in-degree, so each head reduces to a masked mean of z.
    deg = jnp.sum(adj, axis=1, keepdims=True)
    wsm = jax.nn.softmax(head_weights)
    ref = sum(wsm[i] * (adj @ (h @ wf_t[i])) / deg for i in range(H))

    assert out.shape == (N, D)
    assert bool(jnp.all(jnp.isfinite(out)))
    # bf16 Z (and bf16 adj inputs to the MXU) add ~1e-3 relative rounding vs
    # the pure-f32 reference; accumulation remains f32.
    assert bool(jnp.allclose(out, ref, rtol=5e-3, atol=5e-3)), \
        float(jnp.max(jnp.abs(out - ref)))
    print("KERNEL_OK")
</pallas_src>

<mosaic_0001>
module attributes {stable_mosaic.version = 11 : i64} {
  func.func @kernel(%arg0: i32, %arg1: i32, %arg2: memref<64x128xi8, #tpu.memory_space<vmem>>, %arg3: memref<128x128xbf16, #tpu.memory_space<vmem>>, %arg4: memref<64x128xf32, #tpu.memory_space<vmem>>, %arg5: memref<64x128xf32, #tpu.memory_space<vmem>>) attributes {dimension_semantics = [#tpu.dimension_semantics<parallel>, #tpu.dimension_semantics<arbitrary>], iteration_bounds = array<i64: 1, 1>, scalar_prefetch = 0 : i64, scratch_operands = 1 : i64, tpu.core_type = #tpu.core_type<tc>, window_params = [{transform_indices = @transform_0, window_bounds = array<i64: 64, 128>}, {transform_indices = @transform_1, window_bounds = array<i64: 128, 128>}, {transform_indices = @transform_2, window_bounds = array<i64: 64, 128>}]} {
    %c0_i32 = arith.constant 0 : i32
    %0 = arith.cmpi eq, %arg1, %c0_i32 : i32
    %1 = arith.extui %0 : i1 to i32
    %c0_i32_0 = arith.constant 0 : i32
    %2 = arith.cmpi ne, %1, %c0_i32_0 : i32
    scf.if %2 {
      %cst_10 = arith.constant 0.000000e+00 : f32
      %13 = vector.broadcast %cst_10 : f32 to vector<64x128xf32>
      %c0_11 = arith.constant 0 : index
      %c0_12 = arith.constant 0 : index
      %14 = vector.load %arg5[%c0_11, %c0_12] : memref<64x128xf32, #tpu.memory_space<vmem>>, vector<64x128xf32>
      tpu.vector_store %arg5[%c0_11, %c0_12], %13 {strides = array<i32>} : memref<64x128xf32, #tpu.memory_space<vmem>>, vector<64x128xf32>,
    } else {
    }
    %c0 = arith.constant 0 : index
    %c0_1 = arith.constant 0 : index
    %3 = vector.load %arg2[%c0, %c0_1] : memref<64x128xi8, #tpu.memory_space<vmem>>, vector<64x128xi8>
    %4 = arith.sitofp %3 : vector<64x128xi8> to vector<64x128xbf16>
    %c0_2 = arith.constant 0 : index
    %c0_3 = arith.constant 0 : index
    %5 = vector.load %arg5[%c0_2, %c0_3] : memref<64x128xf32, #tpu.memory_space<vmem>>, vector<64x128xf32>
    %c0_4 = arith.constant 0 : index
    %c0_5 = arith.constant 0 : index
    %6 = vector.load %arg3[%c0_4, %c0_5] : memref<128x128xbf16, #tpu.memory_space<vmem>>, vector<128x128xbf16>
    %cst = arith.constant dense<0.000000e+00> : vector<64x128xf32>
    %7 = tpu.matmul %4, %6, %cst {dimension_numbers = #tpu.dot_dimension_numbers<[1], [0], [0], [1], [0, 0, 1, 1], [], []>} : vector<64x128xbf16>, vector<128x128xbf16>, vector<64x128xf32> -> vector<64x128xf32>
    %8 = arith.addf %5, %7 : vector<64x128xf32>
    %c0_6 = arith.constant 0 : index
    %c0_7 = arith.constant 0 : index
    %9 = vector.load %arg5[%c0_6, %c0_7] : memref<64x128xf32, #tpu.memory_space<vmem>>, vector<64x128xf32>
    tpu.vector_store %arg5[%c0_6, %c0_7], %8 {strides = array<i32>} : memref<64x128xf32, #tpu.memory_space<vmem>>, vector<64x128xf32>,
    %c0_i32_8 = arith.constant 0 : i32
    %10 = arith.cmpi eq, %arg1, %c0_i32_8 : i32
    %11 = arith.extui %10 : i1 to i32
    %c0_i32_9 = arith.constant 0 : i32
    %12 = arith.cmpi ne, %11, %c0_i32_9 : i32
    scf.if %12 {
      %c0_10 = arith.constant 0 : index
      %c0_11 = arith.constant 0 : index
      %13 = vector.load %arg5[%c0_10, %c0_11] : memref<64x128xf32, #tpu.memory_space<vmem>>, vector<64x128xf32>
      %14 = vector.extract_strided_slice %13 {offsets = [0, 32], sizes = [64, 1], strides = [1, 1]} : vector<64x128xf32> to vector<64x1xf32>
      %cst_12 = arith.constant 0.000000e+00 : f32
      %15 = vector.broadcast %cst_12 : f32 to vector<64x1xf32>
      %16 = arith.cmpf ogt, %14, %15 : vector<64x1xf32>
      %17 = tpu.reciprocal %14 : vector<64x1xf32> -> vector<64x1xf32>
      %cst_13 = arith.constant 0.000000e+00 : f32
      %18 = vector.broadcast %cst_13 : f32 to vector<64x1xf32>
      %19 = arith.select %16, %17, %18 : vector<64x1xi1>, vector<64x1xf32>
      %20 = vector.broadcast %19 : vector<64x1xf32> to vector<64x128xf32>
      %21 = arith.mulf %13, %20 : vector<64x128xf32>
      %c0_14 = arith.constant 0 : index
      %c0_15 = arith.constant 0 : index
      %22 = vector.load %arg4[%c0_14, %c0_15] : memref<64x128xf32, #tpu.memory_space<vmem>>, vector<64x128xf32>
      tpu.vector_store %arg4[%c0_14, %c0_15], %21 {strides = array<i32>} : memref<64x128xf32, #tpu.memory_space<vmem>>, vector<64x128xf32>,
    } else {
    }
    return
  }
  func.func @transform_0(%arg0: i32, %arg1: i32) -> (i32, i32) {
    %c0_i32 = arith.constant 0 : i32
    return %arg0, %arg1 : i32, i32
  }
  func.func @transform_1(%arg0: i32, %arg1: i32) -> (i32, i32) {
    %c0_i32 = arith.constant 0 : i32
    %c0_i32_0 = arith.constant 0 : i32
    return %arg1, %c0_i32 : i32, i32
  }
  func.func @transform_2(%arg0: i32, %arg1: i32) -> (i32, i32) {
    %c0_i32 = arith.constant 0 : i32
    %c0_i32_0 = arith.constant 0 : i32
    return %arg0, %c0_i32 : i32, i32
  }
}

</mosaic_0001>

<bundles_post_ra>
// kernel: tpu_custom_call.1
= control target key start
LH: loop header
LB: loop body
LE: loop exit
PB: predicated region body
PF: predicated region fallthrough
CT: control target
= control target key end

     0   :  { %7 = vsyncpa [#allocation4], 0  ;;  %s562_s0 = inlined_call_operand.hbm [shape: s8[64,128], index: 0, kind: input, shape index: {}]   ;;  %s563_s1 = inlined_call_operand.hbm [shape: bf16[128,128], index: 1, kind: input, shape index: {}]   ;;  %s564_s2 = inlined_call_operand.hbm [shape: f32[64,128], index: 2, kind: output, shape index: {}]  }
   0x1   :  { %8 = vsyncpa [#allocation7], 0 }
   0x2   :  { %9 = vsyncpa [#allocation5], 0  ;;  %s487_s9 = smov [#allocation3]   ;;  %s415_s13 = scalar_lea.hbm %s562_s0, 256 }
   0x3   :  { %s15_s10 = sshll.u32 %s487_s9, 4  ;;  %p416_p0 = scmp.ne.s32.totalorder %s562_s0, %s415_s13  ;;  %s16_s10 = int_to_ptr.vmem [resolvable:$true] %s15_s10 }
   0x4   :  { %p419_p1 = scmp.lt.u32.totalorder %s415_s13, %s562_s0 }
   0x6   :  { %p421_p2 = pnand %p419_p1, %p416_p0 }
   0x8   :  { %424 = shalt.err (!%p421_p2)
}
   0x9   :  { %s425_s18 = scalar_lea.vmem %s16_s10, 256  ;;  %p430_p4 = scmp.lt.s32.totalorder %s16_s10, %s16_s10 }
   0xa   :  { %p426_p3 = scmp.ne.s32.totalorder %s16_s10, %s425_s18  ;;  %p431_p5 = scmp.lt.s32.totalorder %s425_s18, %s425_s18 }
   0xc   :  { %p432_p6 = por %p431_p5, %p430_p4 }
   0xe   :  { %p433_p7 = pnand %p432_p6, %p426_p3 }
  0x10   :  { %436 = shalt.err (!%p433_p7)
}
  0x11   :  { %s488_s19 = smov 128   ;;  %s489_s20 = smov 8  }
  0x12   :  { %21 = dma.hbm_to_vmem [thread:$0]  %s562_s0, 256, %s16_s10, [#allocation4], %s488_s19, %s488_s19, %s489_s20  }
  0x13   :  { %s490_s23 = smov [#allocation6]   ;;  %s437_s27 = scalar_lea.hbm %s563_s1, 1024 }
  0x14   :  { %s27_s24 = sshll.u32 %s490_s23, 4  ;;  %p438_p8 = scmp.ne.s32.totalorder %s563_s1, %s437_s27  ;;  %s28_s24 = int_to_ptr.vmem [resolvable:$true] %s27_s24 }
  0x15   :  { %p441_p9 = scmp.lt.u32.totalorder %s437_s27, %s563_s1 }
  0x17   :  { %p443_p10 = pnand %p441_p9, %p438_p8 }
  0x19   :  { %446 = shalt.err (!%p443_p10)
}
  0x1a   :  { %s447_s4 = scalar_lea.vmem %s28_s24, 1024  ;;  %p452_p12 = scmp.lt.s32.totalorder %s28_s24, %s28_s24 }
  0x1b   :  { %p448_p11 = scmp.ne.s32.totalorder %s28_s24, %s447_s4  ;;  %p453_p13 = scmp.lt.s32.totalorder %s447_s4, %s447_s4 }
  0x1d   :  { %p454_p0 = por %p453_p13, %p452_p12 }
  0x1f   :  { %p455_p1 = pnand %p454_p0, %p448_p11 }
  0x21   :  { %458 = shalt.err (!%p455_p1)
}
  0x22   :  { %s491_s0 = smov 64   ;;  %s492_s5 = smov 4  }
  0x23   :  { %33 = dma.hbm_to_vmem [thread:$0]  %s563_s1, 1024, %s28_s24, [#allocation7], %s491_s0, %s491_s0, %s492_s5  }
  0x24   :  { %481 = dma.done.wait [#allocation4], 256  }
  0x25   :  { %482 = vsyncadd [#allocation4], 4294967040 }
  0x26   :  { %483 = dma.done.wait [#allocation7], 1024  }
  0x27   :  { %484 = vsyncadd [#allocation7], 4294966272  ;;  %v391_v0 = vld [vmem:[#allocation6] sm:$0xff]   ;;  %v392_v1 = vld [vmem:[#allocation6 + $0x8] sm:$0xff]   ;;  %v493_v14 = vmov 32   ;;  %s494_s1 = smov [#allocation8]  }
  0x28   :  { %341 = vmatprep.subr.bf16.mxu0 %v391_v0  ;;  %365 = vmatprep.subr.bf16.mxu1 %v391_v0  ;;  %v393_v2 = vld [vmem:[#allocation6 + $0x10] sm:$0xff]   ;;  %v394_v3 = vld [vmem:[#allocation6 + $0x18] sm:$0xff]   ;;  %v395_v8 = vld [vmem:[#allocation6 + $0x20] sm:$0xff]   ;;  %s308_s8 = sshll.u32 %s494_s1, 4  ;;  %s309_s8 = int_to_ptr.vmem [resolvable:$true] %s308_s8 }
  0x29   :  { %342 = vmatpush3.bf16.msra.mxu0 %v391_v0  ;;  %373 = vmatpush3.bf16.msra.mxu1 %v391_v0  ;;  %v53_v4 = vld [vmem:[#allocation3] sm:$0xff]  ;;  %v54_v5 = vld [vmem:[#allocation3 + $0x8] sm:$0xff]  ;;  %v396_v9 = vld [vmem:[#allocation6 + $0x28] sm:$0xff]   ;;  %s459_s9 = scalar_lea.vmem %s309_s8, 1024  ;;  %p464_p3 = scmp.lt.s32.totalorder %s309_s8, %s309_s8 }
  0x2a   :  { %343 = vmatprep.subr.bf16.mxu0 %v392_v1  ;;  %366 = vmatprep.subr.bf16.mxu1 %v392_v1  ;;  %v55_v6 = vunpack.c.l.s8.bf16 %v53_v4  ;;  %v57_v7 = vunpack.c.l.s8.bf16 %v54_v5  ;;  %v397_v10 = vld [vmem:[#allocation6 + $0x30] sm:$0xff]   ;;  %v398_v11 = vld [vmem:[#allocation6 + $0x38] sm:$0xff]   ;;  %v56_v12 = vunpack.c.h.s8.bf16 %v53_v4  ;;  %v58_v13 = vunpack.c.h.s8.bf16 %v54_v5  ;;  %p460_p2 = scmp.ne.s32.totalorder %s309_s8, %s459_s9  ;;  %p465_p4 = scmp.lt.s32.totalorder %s459_s9, %s459_s9 }
  0x2b   :  { %389 = vset.pattern.permute.xlu1 %v493_v14  ;;  %390 = vset.pattern.permute.xlu0 %v493_v14 }
  0x2c   :  { %357 = vmatprep.mubr.bf16.mxu0 %v55_v6  ;;  %361 = vmatprep.mubr.bf16.mxu1 %v57_v7  ;;  %p466_p5 = por %p465_p4, %p464_p3 }
  0x2d   :  { %344 = vmatpush3.bf16.msra.mxu0 %v392_v1  ;;  %374 = vmatpush3.bf16.msra.mxu1 %v392_v1 }
  0x2e   :  { %345 = vmatprep.subr.bf16.mxu0 %v393_v2  ;;  %367 = vmatprep.subr.bf16.mxu1 %v393_v2  ;;  %p467_p6 = pnand %p466_p5, %p460_p2 }
  0x31   :  { %346 = vmatpush3.bf16.msra.mxu0 %v393_v2  ;;  %375 = vmatpush3.bf16.msra.mxu1 %v393_v2 }
  0x32   :  { %347 = vmatprep.subr.bf16.mxu0 %v394_v3  ;;  %368 = vmatprep.subr.bf16.mxu1 %v394_v3 }
  0x35   :  { %348 = vmatpush3.bf16.msra.mxu0 %v394_v3  ;;  %376 = vmatpush3.bf16.msra.mxu1 %v394_v3 }
  0x36   :  { %349 = vmatprep.subr.bf16.mxu0 %v395_v8  ;;  %369 = vmatprep.subr.bf16.mxu1 %v395_v8 }
  0x39   :  { %350 = vmatpush3.bf16.msra.mxu0 %v395_v8  ;;  %377 = vmatpush3.bf16.msra.mxu1 %v395_v8 }
  0x3a   :  { %351 = vmatprep.subr.bf16.mxu0 %v396_v9  ;;  %370 = vmatprep.subr.bf16.mxu1 %v396_v9 }
  0x3d   :  { %352 = vmatpush3.bf16.msra.mxu0 %v396_v9  ;;  %378 = vmatpush3.bf16.msra.mxu1 %v396_v9 }
  0x3e   :  { %353 = vmatprep.subr.bf16.mxu0 %v397_v10  ;;  %371 = vmatprep.subr.bf16.mxu1 %v397_v10 }
  0x41   :  { %354 = vmatpush3.bf16.msra.mxu0 %v397_v10  ;;  %379 = vmatpush3.bf16.msra.mxu1 %v397_v10 }
  0x42   :  { %355 = vmatprep.subr.bf16.mxu0 %v398_v11  ;;  %372 = vmatprep.subr.bf16.mxu1 %v398_v11 }
  0x45   :  { %356 = vmatpush3.bf16.msra.mxu0 %v398_v11  ;;  %380 = vmatpush3.bf16.msra.mxu1 %v398_v11 }
  0x48   :  { %358 = vmatmul.mubr.bf16.vlgmr.msra.gmra.mrb[0].mxu0 %v56_v12  ;;  %362 = vmatmul.mubr.bf16.vlgmr.msra.gmra.mrb[0].mxu1 %v58_v13 }
 0x11b   :  { %v359_v15 = vpop.f32.mrb[0].mxu0  ;;  %v537_v16 = vpop.f32.mrb[0].mxu1 }
 0x11c   :  { %399 = vrcp.f32 %v359_v15  ;;  %v165_v17 = vpop.f32.mrb[1].mxu0  ;;  %v181_v18 = vpop.f32.mrb[1].mxu1  ;;  %vm225_vm0 = vcmp.gt.f32.partialorder %v359_v15, 0.0  ;;  %vm229_vm7 = vcmp.gt.f32.partialorder %v537_v16, 0.0 }
 0x11d   :  { %v360_v19 = vpop.f32.mrb[2].mxu0  ;;  %v539_v20 = vpop.f32.mrb[2].mxu1  ;;  %401 = vrcp.f32 %v165_v17  ;;  %vm223_vm1 = vcmp.gt.f32.partialorder %v165_v17, 0.0  ;;  %vm227_vm3 = vcmp.gt.f32.partialorder %v181_v18, 0.0 }
 0x11e   :  { %v168_v21 = vpop.f32.mrb[3].mxu0  ;;  %v184_v22 = vpop.f32.mrb[3].mxu1  ;;  %403 = vrcp.f32 %v181_v18  ;;  %vm226_vm2 = vcmp.gt.f32.partialorder %v360_v19, 0.0  ;;  %vm230_vm6 = vcmp.gt.f32.partialorder %v539_v20, 0.0 }
 0x11f   :  { %405 = vrcp.f32 %v360_v19  ;;  %vm228_vm4 = vcmp.gt.f32.partialorder %v184_v22, 0.0  ;;  %vm224_vm5 = vcmp.gt.f32.partialorder %v168_v21, 0.0 }
 0x120   :  { %407 = vrcp.f32 %v184_v22 }
 0x121   :  { %409 = vrcp.f32 %v168_v21 }
 0x122   :  { %411 = vrcp.f32 %v539_v20 }
 0x123   :  { %413 = vrcp.f32 %v537_v16 }
 0x126   :  { %v400_v23 = vpop.eup %399 }
 0x127   :  { %v241_v24 = vsel %vm225_vm0, %v400_v23, 0.0  ;;  %v402_v25 = vpop.eup %401 }
 0x128   :  { %259 = vperm.xlu1 %389, %v241_v24   ;;  %v404_v26 = vpop.eup %403  ;;  %v239_v27 = vsel %vm223_vm1, %v402_v25, 0.0 }
 0x129   :  { %v406_v28 = vpop.eup %405  ;;  %249 = vperm.xlu0 %390, %v239_v27   ;;  %v243_v31 = vsel %vm227_vm3, %v404_v26, 0.0 }
 0x12a   :  { %v242_v29 = vsel %vm226_vm2, %v406_v28, 0.0  ;;  %v408_v30 = vpop.eup %407 }
 0x12b   :  { %v410_v32 = vpop.eup %409  ;;  %v244_v33 = vsel %vm228_vm4, %v408_v30, 0.0 }
 0x12c   :  { %264 = vperm.xlu1 %389, %v242_v29   ;;  %v412_v34 = vpop.eup %411  ;;  %v240_v35 = vsel %vm224_vm5, %v410_v32, 0.0 }
 0x12d   :  { %269 = vperm.xlu0 %390, %v243_v31   ;;  %v414_v36 = vpop.eup %413  ;;  %v246_v37 = vsel %vm230_vm6, %v412_v34, 0.0 }
 0x12e   :  { %v245_v38 = vsel %vm229_vm7, %v414_v36, 0.0 }
 0x130   :  { %274 = vperm.xlu1 %389, %v244_v33  }
 0x131   :  { %254 = vperm.xlu0 %390, %v240_v35  }
 0x134   :  { %284 = vperm.xlu1 %389, %v246_v37  }
 0x135   :  { %279 = vperm.xlu0 %390, %v245_v38  }
 0x1a7   :  { %v260_v39 = vpop.permute.xlu1 %259 }
 0x1a8   :  { %v289_v40 = vmul.f32 %v359_v15, %v260_v39  ;;  %v250_v41 = vpop.permute.xlu0 %249 }
 0x1a9   :  { %v287_v42 = vmul.f32 %v250_v41, %v165_v17 }
 0x1aa   :  { %297 = vst [vmem:[#allocation8 + $0x10] sm:$0xff] %v289_v40 }
 0x1ab   :  { %v265_v43 = vpop.permute.xlu1 %264  ;;  %295 = vst [vmem:[#allocation8] sm:$0xff] %v287_v42 }
 0x1ac   :  { %v290_v44 = vmul.f32 %v360_v19, %v265_v43  ;;  %v270_v45 = vpop.permute.xlu0 %269 }
 0x1ad   :  { %v291_v46 = vmul.f32 %v270_v45, %v181_v18 }
 0x1ae   :  { %298 = vst [vmem:[#allocation8 + $0x18] sm:$0xff] %v290_v44 }
 0x1af   :  { %v275_v47 = vpop.permute.xlu1 %274  ;;  %299 = vst [vmem:[#allocation8 + $0x20] sm:$0xff] %v291_v46 }
 0x1b0   :  { %v292_v48 = vmul.f32 %v275_v47, %v184_v22  ;;  %v255_v49 = vpop.permute.xlu0 %254 }
 0x1b1   :  { %v288_v50 = vmul.f32 %v255_v49, %v168_v21 }
 0x1b2   :  { %300 = vst [vmem:[#allocation8 + $0x28] sm:$0xff] %v292_v48 }
 0x1b3   :  { %v285_v51 = vpop.permute.xlu1 %284  ;;  %296 = vst [vmem:[#allocation8 + $0x8] sm:$0xff] %v288_v50 }
 0x1b4   :  { %v294_v52 = vmul.f32 %v539_v20, %v285_v51  ;;  %v280_v53 = vpop.permute.xlu0 %279 }
 0x1b5   :  { %v293_v54 = vmul.f32 %v537_v16, %v280_v53 }
 0x1b6   :  { %302 = vst [vmem:[#allocation8 + $0x38] sm:$0xff] %v294_v52 }
 0x1b7   :  { %301 = vst [vmem:[#allocation8 + $0x30] sm:$0xff] %v293_v54 }
 0x1b8   :  { %470 = shalt.err (!%p467_p6)
}
 0x1b9   :  { %s471_s12 = scalar_lea.hbm %s564_s2, 1024 }
 0x1ba   :  { %p472_p7 = scmp.ne.s32.totalorder %s564_s2, %s471_s12  ;;  %p475_p8 = scmp.lt.u32.totalorder %s471_s12, %s564_s2 }
 0x1bc   :  { %p477_p9 = pnand %p475_p8, %p472_p7 }
 0x1be   :  { %480 = shalt.err (!%p477_p9)
}
 0x1bf   :  { %314 = dma.vmem_to_hbm [thread:$0]  %s309_s8, 1024, %s564_s2, [#allocation5], %s488_s19, %s488_s19, %s489_s20  }
 0x1c0   :  { %485 = dma.done.wait [#allocation5], 1024  }
 0x1c1   :  { %486 = vsyncadd [#allocation5], 4294966272 }
 0x1c2   :  { %318 = vsyncpa [#allocation4], 1 }
 0x1c3   :  { %319 = vsyncpa [#allocation7], 1 }
 0x1c4   :  { %320 = vsyncpa [#allocation5], 1 }

</bundles_post_ra>
